<compile_context>
chip_gen: v7x
topology: tpu7x:2x2x1
jax: 0.10.0
libtpu: 0.0.40
codegen_flags: <defaults>
</compile_context>

<pallas_src>
import jax
import jax.numpy as jnp
from jax import lax
from jax.experimental import pallas as pl
from jax.experimental.pallas import tpu as pltpu


def _fusion_kernel(tok_ref, wdiff_ref, wfin_ref, bfin_ref, bdiff_ref, out_ref):
    # tok_ref  : (TB, T, F)  token slab for TB batch rows (f32 or bf16)
    # wdiff_ref: (1, F)      fc.weight[1] - fc.weight[0]        (VMEM, f32)
    # wfin_ref : (F, 2)      fc_final.weight^T                  (VMEM, f32)
    # bfin_ref : (1, 2)      fc_final.bias                      (VMEM, f32)
    # bdiff_ref: (1,)        fc.bias[1] - fc.bias[0]            (SMEM scalar)
    # out_ref  : (TB, 2)
    tok = tok_ref[...].astype(jnp.float32)                           # (TB,T,F)
    TB, T, F = tok.shape

    # Inverse L2 norm per token (rsqrt -> EUP slot).  ntok never materialized.
    inv_norm = lax.rsqrt(jnp.sum(tok * tok, axis=-1))                # (TB,T)

    # Per-token cancer prob: sigmoid(w_diff·tok + b_diff).  VPU mult + lane reduce.
    logit = jnp.sum(tok * wdiff_ref[...], axis=-1) + bdiff_ref[0]    # (TB,T)
    cancer = 1.0 / (1.0 + jnp.exp(-logit))                           # (TB,T) exact

    # argmax over tokens (index of the first maximum).
    iota = lax.broadcasted_iota(jnp.int32, (TB, T), 1)               # (TB,T)
    mx = jnp.max(cancer, axis=-1, keepdims=True)                     # (TB,1)
    idx = jnp.min(jnp.where(cancer == mx, iota, T), axis=-1,
                  keepdims=True)                                     # (TB,1)
    onehot = (iota == idx).astype(jnp.float32)                       # (TB,T)

    # Gather the selected RAW token (one-hot multiply + sublane reduce) and its
    # inverse norm — only one attention row is ever needed.
    iota3 = lax.broadcasted_iota(jnp.int32, (TB, T, 1), 1)           # (TB,T,1)
    onehot3 = (iota3 == idx[:, :, None]).astype(jnp.float32)         # (TB,T,1)
    sel = jnp.sum(onehot3 * tok, axis=1, keepdims=True)              # (TB,1,F)
    inv_sel = jnp.sum(onehot * inv_norm, axis=-1, keepdims=True)     # (TB,1)

    # Selected cosine-similarity row: (tok_idx·tok_t) * |tok_idx|^-1 * |tok_t|^-1.
    scores = jnp.sum(sel * tok, axis=-1) * inv_norm * inv_sel        # (TB,T)
    # scores ∈ [-1,1] so exp cannot overflow; the softmax row-max shift and
    # denominator both cancel in the final renormalization -> skip them.
    w = jnp.exp(scores) * cancer                                     # (TB,T)
    w = w / jnp.sum(w, axis=-1, keepdims=True)                       # (TB,T) exact

    # Fuse tokens (weighted sum over T), then one real (TB,F)@(F,2) matmul.
    xf = jnp.sum(w[:, :, None] * tok, axis=1)                        # (TB,F)
    out = jnp.dot(xf, wfin_ref[...],
                  preferred_element_type=jnp.float32) + bfin_ref[...]   # (TB,2)
    out_ref[...] = out.astype(out_ref.dtype)


def prepare_params(w_fc, b_fc, w_final, b_final):
    """One-time weight preparation (hoisted off the per-call path).

    w_fc / w_final: PyTorch-style Linear weights (2, F); b_fc / b_final: (2,).
    """
    F = w_fc.shape[1]
    w_diff = (w_fc[1] - w_fc[0]).reshape(1, F).astype(jnp.float32)      # (1, F)
    b_diff = (b_fc[1] - b_fc[0]).reshape(1).astype(jnp.float32)         # (1,)  -> SMEM
    w_fin = jnp.asarray(w_final, jnp.float32).T.reshape(F, 2)           # (F, 2)
    b_fin = jnp.asarray(b_final, jnp.float32).reshape(1, 2)             # (1, 2)
    return w_diff, b_diff, w_fin, b_fin


def _choose_tb(B, T, F, vmem_limit_bytes, in_itemsize, max_tb):
    """Batch rows per grid step, sized from the per-generation VMEM budget."""
    # Lane/sublane-padded VMEM footprint of one (T, F) token slab.
    t_pad = -(-T // 8) * 8
    f_pad = -(-F // 128) * 128
    # ~2 double-buffered input blocks + ~5 live f32 (T,F)-sized values per row
    # (f32 tok + broadcast-multiply temporaries) — conservative estimate.
    per_row = t_pad * f_pad * (2 * in_itemsize + 5 * 4)
    tb = max(1, vmem_limit_bytes // per_row)
    tb = min(tb, max_tb)
    if B < 16:
        # Tiny batch: a single block.  TB == B keeps the (TB, 2) output block
        # legal (second-to-last block dim must be a multiple of 8 or the full dim).
        return int(B)
    # >= 2 grid steps so the "parallel" batch axis can feed both v7x TensorCores,
    # and keep TB a multiple of 8 for the (TB, 2) output block.
    tb = min(tb, -(-B // 2))
    tb = max(8, (tb // 8) * 8)   # for extreme T*F this may exceed budget; T/F tiling not needed here
    return int(min(tb, B))


def patch_fusion_attention(x, params, *, max_tb=1024, vmem_limit_bytes=None):
    """x: (B, ..., F) float32 or bfloat16; params from prepare_params. Returns (B, 2) f32."""
    w_diff, b_diff, w_fin, b_fin = params
    B = x.shape[0]
    F = x.shape[-1]
    tokens = x.reshape(B, -1, F)          # keep input dtype; kernel upcasts to f32
    T = tokens.shape[1]

    if vmem_limit_bytes is None:
        # Per-generation scoped-VMEM budget: ~3/4 of physical VMEM
        # (96 MiB on v5e/v6e's 128 MiB, 48 MiB on v7x's 64 MiB).
        try:
            cap = int(pltpu.get_tpu_info().vmem_capacity_bytes)
        except Exception:
            cap = 64 * 1024 * 1024        # conservative fallback (v7x-sized)
        vmem_limit_bytes = min(int(0.75 * cap), 100 * 1024 * 1024)

    TB = _choose_tb(B, T, F, vmem_limit_bytes, tokens.dtype.itemsize, max_tb)
    num_blocks = pl.cdiv(B, TB)           # ragged last block: Pallas masks the writeback

    grid_spec = pltpu.PrefetchScalarGridSpec(
        num_scalar_prefetch=0,
        grid=(num_blocks,),
        in_specs=[
            pl.BlockSpec((TB, T, F), lambda b: (b, 0, 0)),        # tokens (TB rows)
            pl.BlockSpec((1, F), lambda b: (0, 0)),               # fc weight-row diff
            pl.BlockSpec((F, 2), lambda b: (0, 0)),               # fc_final weight^T
            pl.BlockSpec((1, 2), lambda b: (0, 0)),               # fc_final bias
            pl.BlockSpec(memory_space=pltpu.MemorySpace.SMEM),    # fc bias diff (scalar)
        ],
        out_specs=pl.BlockSpec((TB, 2), lambda b: (b, 0)),
    )

    return pl.pallas_call(
        _fusion_kernel,
        out_shape=jax.ShapeDtypeStruct((B, 2), jnp.float32),
        grid_spec=grid_spec,
        compiler_params=pltpu.CompilerParams(
            # Disjoint output blocks per step -> shardable across both v7x
            # TensorCores; near-neutral on single-core v5e/v6e.
            dimension_semantics=("parallel",),
            vmem_limit_bytes=int(vmem_limit_bytes),
        ),
    )(tokens, w_diff, w_fin, b_fin, b_diff)


def _reference(x, w_fc, b_fc, w_final, b_final):
    """Pure-JAX reference mirroring the PyTorch forward."""
    B, F = x.shape[0], x.shape[-1]
    tokens = x.reshape(B, -1, F)
    ntok = tokens / jnp.linalg.norm(tokens, axis=-1, keepdims=True)
    attn = jnp.einsum('btf,bTf->btT', ntok, ntok)
    attn = jax.nn.softmax(attn, axis=-1)
    cancer = jax.nn.softmax(tokens @ w_fc.T + b_fc, axis=-1)[:, :, 1]
    idx = jnp.argmax(cancer, axis=1)
    attn_idx = attn[jnp.arange(B), idx]
    attn_idx = attn_idx * cancer
    attn_idx = attn_idx / attn_idx.sum(-1, keepdims=True)
    x_fused = jnp.einsum('bt,btf->bf', attn_idx, tokens)
    return x_fused @ w_final.T + b_final


if __name__ == "__main__":
    key = jax.random.PRNGKey(0)
    k_x, k_w1, k_b1, k_w2, k_b2, k_x2 = jax.random.split(key, 6)

    B, H, W, F = 2, 4, 4, 32          # tokens T = H*W = 16, nfeatures = 32
    x = jax.random.normal(k_x, (B, H, W, F), dtype=jnp.float32)

    # PyTorch Linear shapes: weight (2, F), bias (2,).
    w_fc = 0.1 * jax.random.normal(k_w1, (2, F), dtype=jnp.float32)
    b_fc = 0.1 * jax.random.normal(k_b1, (2,), dtype=jnp.float32)
    w_final = 0.1 * jax.random.normal(k_w2, (2, F), dtype=jnp.float32)
    b_final = 0.1 * jax.random.normal(k_b2, (2,), dtype=jnp.float32)

    params = prepare_params(w_fc, b_fc, w_final, b_final)   # one-time prep

    # 1) Small f32 case (single block).
    out = jax.block_until_ready(patch_fusion_attention(x, params))
    ref = _reference(x, w_fc, b_fc, w_final, b_final)
    assert out.shape == (B, 2)
    assert jnp.allclose(out, ref, rtol=1e-5, atol=1e-5), (out, ref)

    # 2) Larger batch: multiple grid steps + ragged last block (masked writeback),
    #    exercises the no-host-padding path and the "parallel" batch axis.
    B2 = 20
    x2 = jax.random.normal(k_x2, (B2, H, W, F), dtype=jnp.float32)
    out2 = jax.block_until_ready(patch_fusion_attention(x2, params))
    ref2 = _reference(x2, w_fc, b_fc, w_final, b_final)
    assert out2.shape == (B2, 2)
    assert jnp.allclose(out2, ref2, rtol=1e-5, atol=1e-5), (out2, ref2)

    # 3) bf16 tokens (halves HBM read traffic); kernel upcasts to f32 internally.
    xb = x.astype(jnp.bfloat16)
    out3 = jax.block_until_ready(patch_fusion_attention(xb, params))
    ref3 = _reference(xb.astype(jnp.float32), w_fc, b_fc, w_final, b_final)
    assert jnp.allclose(out3, ref3, rtol=1e-4, atol=1e-4), (out3, ref3)

    print("KERNEL_OK")
</pallas_src>

<mosaic_0001>
module attributes {stable_mosaic.version = 11 : i64} {
  func.func @_fusion_kernel(%arg0: i32, %arg1: memref<2x16x32xf32, #tpu.memory_space<vmem>>, %arg2: memref<1x32xf32, #tpu.memory_space<vmem>>, %arg3: memref<32x2xf32, #tpu.memory_space<vmem>>, %arg4: memref<1x2xf32, #tpu.memory_space<vmem>>, %arg5: memref<1xf32, #tpu.memory_space<smem>>, %arg6: memref<2x2xf32, #tpu.memory_space<vmem>>) attributes {dimension_semantics = [#tpu.dimension_semantics<parallel>], iteration_bounds = array<i64: 1>, scalar_prefetch = 0 : i64, scratch_operands = 0 : i64, tpu.core_type = #tpu.core_type<tc>, window_params = [{transform_indices = @transform_0, window_bounds = array<i64: 2, 16, 32>}, {pipeline_mode = #tpu.pipeline_mode<synchronous>, transform_indices = @transform_1, window_bounds = array<i64: 1, 32>}, {pipeline_mode = #tpu.pipeline_mode<synchronous>, transform_indices = @transform_2, window_bounds = array<i64: 32, 2>}, {pipeline_mode = #tpu.pipeline_mode<synchronous>, transform_indices = @transform_3, window_bounds = array<i64: 1, 2>}, {transform_indices = @transform_4, window_bounds = array<i64: 1>}, {transform_indices = @transform_5, window_bounds = array<i64: 2, 2>}]} {
    %c0 = arith.constant 0 : index
    %c0_0 = arith.constant 0 : index
    %c0_1 = arith.constant 0 : index
    %0 = vector.load %arg1[%c0, %c0_0, %c0_1] : memref<2x16x32xf32, #tpu.memory_space<vmem>>, vector<2x16x32xf32>
    %1 = arith.mulf %0, %0 : vector<2x16x32xf32>
    %cst = arith.constant dense<0.000000e+00> : vector<2x16xf32>
    %2 = vector.multi_reduction <add>, %1, %cst [2] : vector<2x16x32xf32> to vector<2x16xf32>
    %3 = math.rsqrt %2 : vector<2x16xf32>
    %c0_2 = arith.constant 0 : index
    %c0_3 = arith.constant 0 : index
    %4 = vector.load %arg2[%c0_2, %c0_3] : memref<1x32xf32, #tpu.memory_space<vmem>>, vector<1x32xf32>
    %5 = vector.shape_cast %4 : vector<1x32xf32> to vector<1x1x32xf32>
    %6 = vector.broadcast %5 : vector<1x1x32xf32> to vector<2x16x32xf32>
    %7 = arith.mulf %0, %6 : vector<2x16x32xf32>
    %cst_4 = arith.constant dense<0.000000e+00> : vector<2x16xf32>
    %8 = vector.multi_reduction <add>, %7, %cst_4 [2] : vector<2x16x32xf32> to vector<2x16xf32>
    %c0_5 = arith.constant 0 : index
    %9 = memref.load %arg5[%c0_5] : memref<1xf32, #tpu.memory_space<smem>>
    %10 = vector.broadcast %9 : f32 to vector<2x16xf32>
    %11 = arith.addf %8, %10 : vector<2x16xf32>
    %cst_6 = arith.constant 0.000000e+00 : f32
    %12 = vector.broadcast %cst_6 : f32 to vector<2x16xf32>
    %13 = arith.subf %12, %11 : vector<2x16xf32>
    %14 = math.exp %13 : vector<2x16xf32>
    %cst_7 = arith.constant 1.000000e+00 : f32
    %15 = vector.broadcast %cst_7 : f32 to vector<2x16xf32>
    %16 = arith.addf %15, %14 : vector<2x16xf32>
    %cst_8 = arith.constant 1.000000e+00 : f32
    %17 = vector.broadcast %cst_8 : f32 to vector<2x16xf32>
    %18 = arith.divf %17, %16 : vector<2x16xf32>
    %19 = tpu.iota {dimensions = array<i32: 1>} : vector<2x16xi32>
    %cst_9 = arith.constant dense<0xFF800000> : vector<2xf32>
    %20 = vector.multi_reduction <maximumf>, %18, %cst_9 [1] : vector<2x16xf32> to vector<2xf32>
    %21 = vector.shape_cast %20 : vector<2xf32> to vector<2x1xf32>
    %22 = vector.broadcast %21 : vector<2x1xf32> to vector<2x16xf32>
    %23 = arith.cmpf oeq, %18, %22 : vector<2x16xf32>
    %c16_i32 = arith.constant 16 : i32
    %24 = vector.broadcast %c16_i32 : i32 to vector<2x16xi32>
    %25 = arith.select %23, %19, %24 : vector<2x16xi1>, vector<2x16xi32>
    %cst_10 = arith.constant dense<2147483647> : vector<2xi32>
    %26 = vector.multi_reduction <minsi>, %25, %cst_10 [1] : vector<2x16xi32> to vector<2xi32>
    %27 = vector.shape_cast %26 : vector<2xi32> to vector<2x1xi32>
    %28 = vector.broadcast %27 : vector<2x1xi32> to vector<2x16xi32>
    %29 = arith.cmpi eq, %19, %28 : vector<2x16xi32>
    %30 = arith.extui %29 : vector<2x16xi1> to vector<2x16xi32>
    %31 = arith.sitofp %30 : vector<2x16xi32> to vector<2x16xf32>
    %32 = tpu.iota {dimensions = array<i32: 1>} : vector<2x16x1xi32>
    %33 = vector.shape_cast %27 : vector<2x1xi32> to vector<2x1x1xi32>
    %34 = vector.broadcast %33 : vector<2x1x1xi32> to vector<2x16x1xi32>
    %35 = arith.cmpi eq, %32, %34 : vector<2x16x1xi32>
    %36 = arith.extui %35 : vector<2x16x1xi1> to vector<2x16x1xi32>
    %37 = arith.sitofp %36 : vector<2x16x1xi32> to vector<2x16x1xf32>
    %38 = vector.broadcast %37 : vector<2x16x1xf32> to vector<2x16x32xf32>
    %39 = arith.mulf %38, %0 : vector<2x16x32xf32>
    %cst_11 = arith.constant dense<0.000000e+00> : vector<2x32xf32>
    %40 = vector.multi_reduction <add>, %39, %cst_11 [1] : vector<2x16x32xf32> to vector<2x32xf32>
    %41 = vector.shape_cast %40 : vector<2x32xf32> to vector<2x1x32xf32>
    %42 = arith.mulf %31, %3 : vector<2x16xf32>
    %cst_12 = arith.constant dense<0.000000e+00> : vector<2xf32>
    %43 = vector.multi_reduction <add>, %42, %cst_12 [1] : vector<2x16xf32> to vector<2xf32>
    %44 = vector.shape_cast %43 : vector<2xf32> to vector<2x1xf32>
    %45 = vector.broadcast %41 : vector<2x1x32xf32> to vector<2x16x32xf32>
    %46 = arith.mulf %45, %0 : vector<2x16x32xf32>
    %cst_13 = arith.constant dense<0.000000e+00> : vector<2x16xf32>
    %47 = vector.multi_reduction <add>, %46, %cst_13 [2] : vector<2x16x32xf32> to vector<2x16xf32>
    %48 = arith.mulf %47, %3 : vector<2x16xf32>
    %49 = vector.broadcast %44 : vector<2x1xf32> to vector<2x16xf32>
    %50 = arith.mulf %48, %49 : vector<2x16xf32>
    %51 = math.exp %50 : vector<2x16xf32>
    %52 = arith.mulf %51, %18 : vector<2x16xf32>
    %cst_14 = arith.constant dense<0.000000e+00> : vector<2xf32>
    %53 = vector.multi_reduction <add>, %52, %cst_14 [1] : vector<2x16xf32> to vector<2xf32>
    %54 = vector.shape_cast %53 : vector<2xf32> to vector<2x1xf32>
    %55 = vector.broadcast %54 : vector<2x1xf32> to vector<2x16xf32>
    %56 = arith.divf %52, %55 : vector<2x16xf32>
    %57 = vector.shape_cast %56 : vector<2x16xf32> to vector<2x16x1xf32>
    %58 = vector.broadcast %57 : vector<2x16x1xf32> to vector<2x16x32xf32>
    %59 = arith.mulf %58, %0 : vector<2x16x32xf32>
    %cst_15 = arith.constant dense<0.000000e+00> : vector<2x32xf32>
    %60 = vector.multi_reduction <add>, %59, %cst_15 [1] : vector<2x16x32xf32> to vector<2x32xf32>
    %c0_16 = arith.constant 0 : index
    %c0_17 = arith.constant 0 : index
    %61 = vector.load %arg3[%c0_16, %c0_17] : memref<32x2xf32, #tpu.memory_space<vmem>>, vector<32x2xf32>
    %cst_18 = arith.constant dense<0.000000e+00> : vector<2x2xf32>
    %62 = tpu.matmul %60, %61, %cst_18 {dimension_numbers = #tpu.dot_dimension_numbers<[1], [0], [0], [1], [0, 0, 1, 1], [], []>} : vector<2x32xf32>, vector<32x2xf32>, vector<2x2xf32> -> vector<2x2xf32>
    %c0_19 = arith.constant 0 : index
    %c0_20 = arith.constant 0 : index
    %63 = vector.load %arg4[%c0_19, %c0_20] : memref<1x2xf32, #tpu.memory_space<vmem>>, vector<1x2xf32>
    %64 = vector.broadcast %63 : vector<1x2xf32> to vector<2x2xf32>
    %65 = arith.addf %62, %64 : vector<2x2xf32>
    %c0_21 = arith.constant 0 : index
    %c0_22 = arith.constant 0 : index
    %66 = vector.load %arg6[%c0_21, %c0_22] : memref<2x2xf32, #tpu.memory_space<vmem>>, vector<2x2xf32>
    tpu.vector_store %arg6[%c0_21, %c0_22], %65 {strides = array<i32>} : memref<2x2xf32, #tpu.memory_space<vmem>>, vector<2x2xf32>,
    return
  }
  func.func @transform_0(%arg0: i32) -> (i32, i32, i32) {
    %c0_i32 = arith.constant 0 : i32
    %c0_i32_0 = arith.constant 0 : i32
    %c0_i32_1 = arith.constant 0 : i32
    return %arg0, %c0_i32, %c0_i32_0 : i32, i32, i32
  }
  func.func @transform_1(%arg0: i32) -> (i32, i32) {
    %c0_i32 = arith.constant 0 : i32
    %c0_i32_0 = arith.constant 0 : i32
    %c0_i32_1 = arith.constant 0 : i32
    return %c0_i32, %c0_i32_0 : i32, i32
  }
  func.func @transform_2(%arg0: i32) -> (i32, i32) {
    %c0_i32 = arith.constant 0 : i32
    %c0_i32_0 = arith.constant 0 : i32
    %c0_i32_1 = arith.constant 0 : i32
    return %c0_i32, %c0_i32_0 : i32, i32
  }
  func.func @transform_3(%arg0: i32) -> (i32, i32) {
    %c0_i32 = arith.constant 0 : i32
    %c0_i32_0 = arith.constant 0 : i32
    %c0_i32_1 = arith.constant 0 : i32
    return %c0_i32, %c0_i32_0 : i32, i32
  }
  func.func @transform_4(%arg0: i32) -> i32 {
    %c0_i32 = arith.constant 0 : i32
    %c0_i32_0 = arith.constant 0 : i32
    return %c0_i32 : i32
  }
  func.func @transform_5(%arg0: i32) -> (i32, i32) {
    %c0_i32 = arith.constant 0 : i32
    %c0_i32_0 = arith.constant 0 : i32
    return %arg0, %c0_i32 : i32, i32
  }
}

</mosaic_0001>

<bundles_post_ra>
// kernel: tpu_custom_call.1
= control target key start
LH: loop header
LB: loop body
LE: loop exit
PB: predicated region body
PF: predicated region fallthrough
CT: control target
= control target key end

     0   :  { %vm30_vm0 = vcmask 261120   ;;  %s849_s0 = inlined_call_operand.vmem [shape: f32[2,16,32], index: 0, kind: input, shape index: {}]   ;;  %s850_s1 = inlined_call_operand.vmem [shape: f32[1,32], index: 1, kind: input, shape index: {}]   ;;  %s851_s2 = inlined_call_operand.vmem [shape: f32[32,2], index: 2, kind: input, shape index: {}]   ;;  %s852_s3 = inlined_call_operand.vmem [shape: f32[1,2], index: 3, kind: input, shape index: {}]   ;;  %s853_s4 = inlined_call_operand.<no memory space> [shape: f32[1], index: 4, kind: input, shape index: {}]   ;;  %s854_s5 = inlined_call_operand.hbm [shape: f32[2,2], index: 5, kind: output, shape index: {}]  }
   0x1   :  { %v663_v0 = vld [vmem:[%s849_s0 + $0x10] sm:$0xff]  ;;  %v528_v1 = vld [vmem:[%s850_s1] ss:$0 sm:$0xff]  ;;  %v678_v5 = vld [vmem:[%s849_s0 + $0x18] sm:$0xff] }
   0x2   :  { %v671_v2 = vld [vmem:[%s849_s0] sm:$0xff]  ;;  %v56_v3 = vmul.f32 %v528_v1, %v663_v0  ;;  %v683_v6 = vld [vmem:[%s849_s0 + $0x8] sm:$0xff] }
   0x3   :  { %v54_v4 = vmul.f32 %v528_v1, %v671_v2 }
   0x4   :  { %11 = vsyncpa [#allocation4], 0  ;;  %v57_v7 = vmul.f32 %v528_v1, %v678_v5  ;;  %v55_v8 = vmul.f32 %v528_v1, %v683_v6  ;;  %v64_v9 = vsel %vm30_vm0, %v56_v3, 0.0  ;;  %v100_v13 = vlaneseq  ;;  %s629_s11 = smov [#allocation3]  }
   0x5   :  { %v58_v10 = vsel %vm30_vm0, %v54_v4, 0.0  ;;  %65 = vadd.xlane.f32.xlu1 %v64_v9  ;;  %v71_v15 = vstv %s853_s4  ;;  %vm115_vm1 = vcmask 130112   ;;  %vm126_vm2 = vcmask 1041409   ;;  %s520_s12 = sshll.u32 %s629_s11, 4  ;;  %s521_s12 = int_to_ptr.vmem [resolvable:$true] %s520_s12 }
   0x6   :  { %59 = vadd.xlane.f32.xlu0 %v58_v10  ;;  %v67_v11 = vsel %vm30_vm0, %v57_v7, 0.0  ;;  %v61_v12 = vsel %vm30_vm0, %v55_v8, 0.0  ;;  %v691_v14 = vand.u32 127, %v100_v13  ;;  %v697_v40 = vshrl.u32 %v100_v13, 7  ;;  %s601_s13 = scalar_lea.vmem %s521_s12, 32  ;;  %p606_p1 = scmp.lt.s32.totalorder %s521_s12, %s521_s12 }
   0x7   :  { %vm129_vm3 = vcmask 123904   ;;  %v625_v56 = vmov 0   ;;  %vm628_vm14 = vmmov 0   ;;  %vm512_vm15 = vcmask 9216   ;;  %p602_p0 = scmp.ne.s32.totalorder %s521_s12, %s601_s13  ;;  %p607_p2 = scmp.lt.s32.totalorder %s601_s13, %s601_s13 }
   0x8   :  { %v110_v41 = vadd.s32 4294967288, %v691_v14  ;;  %v702_v42 = vsub.s32 %v691_v14, %v697_v40  ;;  %563 = vset.pattern.permute.xlu1 %v625_v56  ;;  %564 = vset.pattern.permute.xlu0 %v625_v56  ;;  %v729_v57 = vsub.s32 0, %v697_v40  ;;  %v732_v58 = vsub.s32 1, %v697_v40 }
   0x9   :  { %68 = vadd.xlane.f32.xlu1 %v67_v11  ;;  %p608_p3 = por %p607_p2, %p606_p1 }
   0xa   :  { %62 = vadd.xlane.f32.xlu0 %v61_v12  ;;  %v705_v43 = vsub.s32 %v110_v41, %v697_v40 }
   0xb   :  { %p609_p4 = pnand %p608_p3, %p602_p0 }
  0x1a   :  { %149 = vbcast.lane.b32.xlu1 %v691_v14, 256 }
  0x92   :  { %v66_v16 = vpop.xlane.xlu1 %65 }
  0x93   :  { %v60_v17 = vpop.xlane.xlu0 %59  ;;  %v74_v18 = vadd.f32 %v71_v15, %v66_v16 }
  0x94   :  { %v72_v19 = vadd.f32 %v71_v15, %v60_v17 }
  0x95   :  { %v78_v20 = vsub.f32 0.0, %v74_v18 }
  0x96   :  { %v76_v21 = vsub.f32 0.0, %v72_v19  ;;  %v69_v22 = vpop.xlane.xlu1 %68 }
  0x97   :  { %v63_v23 = vpop.xlane.xlu0 %62  ;;  %v84_v24 = vmul.f32 1.442695, %v78_v20  ;;  %v75_v26 = vadd.f32 %v71_v15, %v69_v22 }
  0x98   :  { %v80_v25 = vmul.f32 1.442695, %v76_v21  ;;  %v73_v27 = vadd.f32 %v71_v15, %v63_v23  ;;  %v27_v23 = vmul.f32 %v683_v6, %v683_v6 }
  0x99   :  { %565 = vpow2.f32 %v84_v24  ;;  %v79_v28 = vsub.f32 0.0, %v75_v26 }
  0x9a   :  { %v77_v29 = vsub.f32 0.0, %v73_v27  ;;  %567 = vpow2.f32 %v80_v25  ;;  %v150_v62 = vpop.permute.xlu1 %149  ;;  %v34_v24 = vsel %vm30_vm0, %v27_v23, 0.0  ;;  %v29_v25 = vmul.f32 %v678_v5, %v678_v5 }
  0x9b   :  { %v86_v30 = vmul.f32 1.442695, %v79_v28 }
  0x9c   :  { %v82_v31 = vmul.f32 1.442695, %v77_v29  ;;  %v40_v26 = vsel %vm30_vm0, %v29_v25, 0.0 }
  0x9d   :  { %569 = vpow2.f32 %v86_v30  ;;  %v26_v30 = vmul.f32 %v671_v2, %v671_v2 }
  0x9e   :  { %571 = vpow2.f32 %v82_v31 }
  0xa3   :  { %v566_v32 = vpop.eup %565 }
  0xa4   :  { %v568_v33 = vpop.eup %567  ;;  %v90_v34 = vadd.f32 1.0, %v566_v32  ;;  %v31_v32 = vsel %vm30_vm0, %v26_v30, 0.0 }
  0xa5   :  { %v88_v35 = vadd.f32 1.0, %v568_v33  ;;  %v28_v33 = vmul.f32 %v663_v0, %v663_v0 }
  0xa6   :  { %573 = vrcp.f32 %v90_v34 }
  0xa7   :  { %v570_v36 = vpop.eup %569  ;;  %575 = vrcp.f32 %v88_v35  ;;  %v37_v34 = vsel %vm30_vm0, %v28_v33, 0.0 }
  0xa8   :  { %v572_v37 = vpop.eup %571  ;;  %v91_v38 = vadd.f32 1.0, %v570_v36 }
  0xa9   :  { %v89_v39 = vadd.f32 1.0, %v572_v37 }
  0xaa   :  { %577 = vrcp.f32 %v91_v38 }
  0xab   :  { %579 = vrcp.f32 %v89_v39 }
  0xb0   :  { %v707_v44 = vpop.eup %573 }
  0xb1   :  { %v709_v45 = vpop.eup %575  ;;  %v120_v48 = vrot.slane %v707_v44, %v702_v42 }
  0xb2   :  { %v109_v50 = vrot.slane %v709_v45, %v702_v42 }
  0xb4   :  { %v711_v46 = vpop.eup %577 }
  0xb5   :  { %v713_v47 = vpop.eup %579  ;;  %v124_v49 = vrot.slane %v711_v46, %v705_v43 }
  0xb6   :  { %v114_v51 = vrot.slane %v713_v47, %v705_v43 }
  0xb7   :  { %v125_v52 = vsel %vm115_vm1, %v124_v49, %v120_v48  ;;  %v210_v48 = vadd.s32 8, %v697_v40 }
  0xb8   :  { %v116_v53 = vsel %vm115_vm1, %v114_v51, %v109_v50 }
  0xb9   :  { %v127_v54 = vsel %vm126_vm2, %v125_v52, %v116_v53  ;;  %v626_v53 = vmov 0.0  }
  0xba   :  { %v130_v55 = vsel %vm129_vm3, %v127_v54, -inf  ;;  %549 = vmatprep.mubr.msk.f32.mxu0 %vm628_vm14, %v626_v53 }
  0xbb   :  { %131 = vmax.xlane.f32.xlu0 %v130_v55 }
  0xd1   :  { %153 = vbcast.lane.b32.xlu0 %v691_v14, 264 }
 0x148   :  { %v132_v59 = vpop.xlane.xlu0 %131 }
 0x149   :  { %v137_v60 = vrot.slane %v132_v59, %v729_v57  ;;  %v141_v61 = vrot.slane %v132_v59, %v732_v58 }
 0x14b   :  { %vm144_vm4 = vcmp.eq.f32.partialorder %v709_v45, %v137_v60  ;;  %vm147_vm5 = vcmp.eq.f32.partialorder %v711_v46, %v141_v61  ;;  %vm145_vm6 = vcmp.eq.f32.partialorder %v713_v47, %v137_v60  ;;  %vm146_vm7 = vcmp.eq.f32.partialorder %v707_v44, %v141_v61 }
 0x14c   :  { %v154_v63 = vpop.permute.xlu0 %153  ;;  %v155_v1 = vsel %vm144_vm4, %v150_v62, 16  ;;  %v157_v7 = vsel %vm146_vm7, %v150_v62, 16 }
 0x14d   :  { %160 = vperm.xlu1 %563, %v155_v1   ;;  %v158_v3 = vsel %vm147_vm5, %v154_v63, 16  ;;  %v156_v4 = vsel %vm145_vm6, %v154_v63, 16 }
 0x14e   :  { %169 = vperm.xlu0 %564, %v158_v3  }
 0x151   :  { %163 = vperm.xlu1 %563, %v156_v4  }
 0x155   :  { %166 = vperm.xlu1 %563, %v157_v7  }
 0x1cc   :  { %v161_v8 = vpop.permute.xlu1 %160 }
 0x1cd   :  { %v170_v10 = vpop.permute.xlu0 %169  ;;  %v174_v13 = vrot.slane %v161_v8, %v702_v42 }
 0x1ce   :  { %v187_v15 = vrot.slane %v170_v10, %v705_v43 }
 0x1d0   :  { %v164_v9 = vpop.permute.xlu1 %163 }
 0x1d1   :  { %v178_v11 = vrot.slane %v164_v9, %v705_v43 }
 0x1d3   :  { %v179_v17 = vsel %vm115_vm1, %v178_v11, %v174_v13 }
 0x1d4   :  { %v167_v12 = vpop.permute.xlu1 %166 }
 0x1d5   :  { %v183_v16 = vrot.slane %v167_v12, %v702_v42 }
 0x1d7   :  { %v188_v18 = vsel %vm115_vm1, %v187_v15, %v183_v16 }
 0x1d8   :  { %v189_v19 = vsel %vm126_vm2, %v188_v18, %v179_v17 }
 0x1d9   :  { %v190_v20 = vsel %vm129_vm3, %v189_v19, 2147483647 }
 0x1da   :  { %v192_v21 = vshra.s32 %v190_v20, 16  ;;  %v191_v27 = vand.u32 65535, %v190_v20 }
 0x1dc   :  { %v194_v22 = vcvt.s32.f32 %v192_v21  ;;  %v193_v29 = vcvt.s32.f32 %v191_v27 }
 0x1de   :  { %195 = vmin.xlane.f32.xlu1 %v194_v22 }
 0x1e2   :  { %35 = vadd.xlane.f32.xlu1 %v34_v24 }
 0x1e6   :  { %41 = vadd.xlane.f32.xlu1 %v40_v26 }
 0x26b   :  { %v196_v28 = vpop.xlane.xlu1 %195 }
 0x26c   :  { %vm197_vm8 = vcmp.eq.f32.partialorder %v194_v22, %v196_v28  ;;  %v202_v36 = vcvt.f32.s32 %v196_v28 }
 0x26d   :  { %v198_v31 = vsel %vm197_vm8, %v193_v29, inf }
 0x26e   :  { %199 = vmin.xlane.f32.xlu0 %v198_v31  ;;  %v203_v38 = vshll.u32 %v202_v36, 16 }
 0x26f   :  { %v36_v35 = vpop.xlane.xlu1 %35 }
 0x270   :  { %581 = vrsqrt.f32 %v36_v35 }
 0x272   :  { %32 = vadd.xlane.f32.xlu0 %v31_v32 }
 0x273   :  { %v42_v41 = vpop.xlane.xlu1 %41 }
 0x274   :  { %583 = vrsqrt.f32 %v42_v41 }
 0x276   :  { %38 = vadd.xlane.f32.xlu0 %v37_v34 }
 0x27a   :  { %v582_v10 = vpop.eup %581 }
 0x27b   :  { %v264_v21 = vrot.slane %v582_v10, %v705_v43 }
 0x27e   :  { %v584_v13 = vpop.eup %583 }
 0x27f   :  { %v273_v22 = vrot.slane %v584_v13, %v705_v43 }
 0x2fb   :  { %v200_v37 = vpop.xlane.xlu0 %199 }
 0x2fc   :  { %v201_v39 = vcvt.f32.s32 %v200_v37 }
 0x2fe   :  { %v204_v49 = vadd.s32 %v203_v38, %v201_v39 }
 0x2ff   :  { %v33_v50 = vpop.xlane.xlu0 %32 }
 0x300   :  { %v214_v51 = vrot.slane %v204_v49, %v729_v57  ;;  %v218_v52 = vrot.slane %v204_v49, %v732_v58  ;;  %585 = vrsqrt.f32 %v33_v50  ;;  %vm205_vm13 = vcmp.eq.s32.totalorder %v691_v14, %v204_v49 }
 0x301   :  { %v529_v31 = vsel %vm205_vm13, 1.0, %v626_v53 }
 0x302   :  { %vm219_vm9 = vcmp.eq.s32.totalorder %v697_v40, %v214_v51  ;;  %vm220_vm10 = vcmp.eq.s32.totalorder %v210_v48, %v214_v51  ;;  %vm221_vm11 = vcmp.eq.s32.totalorder %v697_v40, %v218_v52  ;;  %vm222_vm12 = vcmp.eq.s32.totalorder %v210_v48, %v218_v52 }
 0x303   :  { %v530_v54 = vsel %vm219_vm9, 1.0, %v626_v53  ;;  %v531_v55 = vsel %vm220_vm10, 1.0, %v626_v53  ;;  %v532_v56 = vsel %vm221_vm11, 1.0, %v626_v53  ;;  %v533_v59 = vsel %vm222_vm12, 1.0, %v626_v53  ;;  %v39_v60 = vpop.xlane.xlu0 %38 }
 0x304   :  { %v231_v61 = vmul.f32 %v530_v54, %v671_v2  ;;  %v232_v62 = vmul.f32 %v531_v55, %v683_v6  ;;  %v233_v63 = vmul.f32 %v532_v56, %v663_v0  ;;  %v234_v1 = vmul.f32 %v533_v59, %v678_v5 }
 0x305   :  { %587 = vrsqrt.f32 %v39_v60 }
 0x306   :  { %v235_v40 = vsel %vm30_vm0, %v231_v61, 0.0  ;;  %v236_v3 = vsel %vm30_vm0, %v232_v62, 0.0  ;;  %v244_v4 = vsel %vm30_vm0, %v233_v63, 0.0  ;;  %v245_v7 = vsel %vm30_vm0, %v234_v1, 0.0 }
 0x307   :  { %v237_v8 = vadd.f32 %v236_v3, %v235_v40  ;;  %v246_v9 = vadd.f32 %v245_v7, %v244_v4 }
 0x309   :  { %v238_v11 = vrot.slane %v237_v8, 4  ;;  %v247_v12 = vrot.slane %v246_v9, 4 }
 0x30a   :  { %v586_v15 = vpop.eup %585 }
 0x30b   :  { %v239_v16 = vadd.f32 %v238_v11, %v237_v8  ;;  %v248_v17 = vadd.f32 %v247_v12, %v246_v9  ;;  %v260_v20 = vrot.slane %v586_v15, %v702_v42 }
 0x30d   :  { %v240_v18 = vrot.slane %v239_v16, 2  ;;  %v249_v19 = vrot.slane %v248_v17, 2  ;;  %v265_v29 = vsel %vm115_vm1, %v264_v21, %v260_v20 }
 0x30f   :  { %v588_v23 = vpop.eup %587  ;;  %v241_v24 = vadd.f32 %v240_v18, %v239_v16  ;;  %v250_v25 = vadd.f32 %v249_v19, %v248_v17 }
 0x310   :  { %v269_v26 = vrot.slane %v588_v23, %v702_v42 }
 0x311   :  { %v242_v27 = vrot.slane %v241_v24, 1  ;;  %v251_v28 = vrot.slane %v250_v25, 1 }
 0x312   :  { %v274_v30 = vsel %vm115_vm1, %v273_v22, %v269_v26 }
 0x313   :  { %v275_v32 = vsel %vm126_vm2, %v274_v30, %v265_v29  ;;  %v243_v33 = vadd.f32 %v242_v27, %v241_v24  ;;  %v252_v34 = vadd.f32 %v251_v28, %v250_v25 }
 0x314   :  { %v277_v35 = vmul.f32 %v529_v31, %v275_v32 }
 0x315   :  { %v281_v36 = vmul.f32 %v243_v33, %v671_v2  ;;  %v282_v14 = vmul.f32 %v243_v33, %v683_v6  ;;  %v283_v39 = vmul.f32 %v252_v34, %v663_v0  ;;  %v284_v48 = vmul.f32 %v252_v34, %v678_v5 }
 0x316   :  { %v278_v37 = vsel %vm129_vm3, %v277_v35, 0.0 }
 0x317   :  { %279 = vadd.xlane.f32.xlu0 %v278_v37  ;;  %v285_v38 = vsel %vm30_vm0, %v281_v36, 0.0  ;;  %v288_v41 = vsel %vm30_vm0, %v282_v14, 0.0  ;;  %v291_v49 = vsel %vm30_vm0, %v283_v39, 0.0  ;;  %v294_v50 = vsel %vm30_vm0, %v284_v48, 0.0  ;;  %v426_v36 = vld [vmem:[%s851_s2] sm:$0xff]  ;;  %v428_v14 = vld [vmem:[%s851_s2 + $0x10] sm:$0xff] }
 0x318   :  { %286 = vadd.xlane.f32.xlu1 %v285_v38  ;;  %v627_v37 = vmov 0.0|0.0   ;;  %v429_v38 = vld [vmem:[%s851_s2 + $0x18] sm:$0xff] }
 0x319   :  { %552 = vmatprep.subr.bf16.mxu0 %v627_v37  ;;  %v556_v39 = vpack.c.bf16 %v429_v38, %v428_v14 }
 0x31b   :  { %289 = vadd.xlane.f32.xlu0 %v288_v41 }
 0x31c   :  { %292 = vadd.xlane.f32.xlu1 %v291_v49 }
 0x31f   :  { %295 = vadd.xlane.f32.xlu0 %v294_v50 }
 0x3a4   :  { %v280_v51 = vpop.xlane.xlu0 %279 }
 0x3a5   :  { %v287_v52 = vpop.xlane.xlu1 %286  ;;  %v305_v54 = vrot.slane %v280_v51, %v729_v57  ;;  %v309_v62 = vrot.slane %v280_v51, %v732_v58 }
 0x3a6   :  { %v297_v55 = vmul.f32 %v586_v15, %v287_v52 }
 0x3a8   :  { %v312_v56 = vmul.f32 %v305_v54, %v297_v55  ;;  %v290_v59 = vpop.xlane.xlu0 %289 }
 0x3a9   :  { %v298_v60 = vmul.f32 %v582_v10, %v290_v59  ;;  %v293_v61 = vpop.xlane.xlu1 %292 }
 0x3aa   :  { %v316_v63 = vmul.f32 1.442695, %v312_v56  ;;  %v299_v1 = vmul.f32 %v588_v23, %v293_v61 }
 0x3ab   :  { %v313_v40 = vmul.f32 %v305_v54, %v298_v60 }
 0x3ac   :  { %589 = vpow2.f32 %v316_v63  ;;  %v314_v3 = vmul.f32 %v309_v62, %v299_v1  ;;  %v296_v4 = vpop.xlane.xlu0 %295 }
 0x3ad   :  { %v318_v7 = vmul.f32 1.442695, %v313_v40  ;;  %v300_v8 = vmul.f32 %v584_v13, %v296_v4 }
 0x3ae   :  { %v320_v9 = vmul.f32 1.442695, %v314_v3 }
 0x3af   :  { %591 = vpow2.f32 %v318_v7  ;;  %v315_v11 = vmul.f32 %v309_v62, %v300_v8 }
 0x3b0   :  { %593 = vpow2.f32 %v320_v9 }
 0x3b1   :  { %v322_v12 = vmul.f32 1.442695, %v315_v11 }
 0x3b3   :  { %595 = vpow2.f32 %v322_v12 }
 0x3b6   :  { %v590_v15 = vpop.eup %589 }
 0x3b7   :  { %v324_v10 = vmul.f32 %v590_v15, %v709_v45 }
 0x3b9   :  { %v592_v16 = vpop.eup %591  ;;  %333 = vperm.xlu1 %563, %v324_v10  }
 0x3ba   :  { %v594_v17 = vpop.eup %593  ;;  %v325_v18 = vmul.f32 %v592_v16, %v713_v47 }
 0x3bb   :  { %v326_v19 = vmul.f32 %v594_v17, %v707_v44 }
 0x3bc   :  { %336 = vperm.xlu0 %564, %v325_v18  }
 0x3bd   :  { %v596_v20 = vpop.eup %595  ;;  %339 = vperm.xlu1 %563, %v326_v19  }
 0x3be   :  { %v327_v13 = vmul.f32 %v596_v20, %v711_v46 }
 0x3c1   :  { %342 = vperm.xlu1 %563, %v327_v13  }
 0x438   :  { %v334_v21 = vpop.permute.xlu1 %333 }
 0x439   :  { %v347_v45 = vrot.slane %v334_v21, %v702_v42 }
 0x43b   :  { %v337_v22 = vpop.permute.xlu0 %336 }
 0x43c   :  { %v340_v23 = vpop.permute.xlu1 %339  ;;  %v351_v24 = vrot.slane %v337_v22, %v705_v43 }
 0x43d   :  { %v356_v26 = vrot.slane %v340_v23, %v702_v42 }
 0x43e   :  { %v352_v44 = vsel %vm115_vm1, %v351_v24, %v347_v45 }
 0x440   :  { %v343_v25 = vpop.permute.xlu1 %342 }
 0x441   :  { %v360_v47 = vrot.slane %v343_v25, %v705_v43 }
 0x443   :  { %v361_v27 = vsel %vm115_vm1, %v360_v47, %v356_v26 }
 0x444   :  { %v362_v28 = vsel %vm126_vm2, %v361_v27, %v352_v44 }
 0x445   :  { %v364_v46 = vsel %vm129_vm3, %v362_v28, 0.0 }
 0x446   :  { %365 = vadd.xlane.f32.xlu1 %v364_v46 }
 0x4d3   :  { %v366_v29 = vpop.xlane.xlu1 %365 }
 0x4d4   :  { %v371_v30 = vrot.slane %v366_v29, %v729_v57  ;;  %v375_v31 = vrot.slane %v366_v29, %v732_v58  ;;  %v427_v57 = vld [vmem:[%s851_s2 + $0x8] sm:$0xff] }
 0x4d5   :  { %v553_v58 = vpack.c.bf16 %v427_v57, %v426_v36 }
 0x4d6   :  { %597 = vrcp.f32 %v371_v30 }
 0x4d7   :  { %599 = vrcp.f32 %v375_v31  ;;  %554 = vmatpush3.bf16.msra.mxu0 %v553_v58 }
 0x4d8   :  { %555 = vmatprep.subr.bf16.mxu0 %v627_v37 }
 0x4db   :  { %557 = vmatpush3.bf16.msra.mxu0 %v556_v39 }
 0x4e0   :  { %v598_v32 = vpop.eup %597 }
 0x4e1   :  { %v379_v42 = vmul.f32 %v598_v32, %v324_v10  ;;  %v380_v43 = vmul.f32 %v598_v32, %v325_v18  ;;  %v600_v33 = vpop.eup %599 }
 0x4e2   :  { %v382_v34 = vmul.f32 %v600_v33, %v326_v19  ;;  %v383_v35 = vmul.f32 %v600_v33, %v327_v13 }
 0x4e3   :  { %386 = vperm.xlu0 %564, %v379_v42  }
 0x4e7   :  { %391 = vperm.xlu0 %564, %v380_v43  }
 0x4eb   :  { %396 = vperm.xlu0 %564, %v382_v34  }
 0x4ef   :  { %401 = vperm.xlu0 %564, %v383_v35  }
 0x562   :  { %v387_v41 = vpop.permute.xlu0 %386 }
 0x563   :  { %v404_v48 = vmul.f32 %v387_v41, %v671_v2 }
 0x565   :  { %v408_v51 = vsel %vm30_vm0, %v404_v48, 0.0 }
 0x566   :  { %v392_v49 = vpop.permute.xlu0 %391 }
 0x567   :  { %v405_v50 = vmul.f32 %v392_v49, %v683_v6 }
 0x569   :  { %v409_v52 = vsel %vm30_vm0, %v405_v50, 0.0 }
 0x56a   :  { %v410_v54 = vadd.f32 %v409_v52, %v408_v51  ;;  %v397_v55 = vpop.permute.xlu0 %396 }
 0x56b   :  { %v406_v59 = vmul.f32 %v397_v55, %v663_v0 }
 0x56c   :  { %v411_v56 = vrot.slane %v410_v54, 4 }
 0x56d   :  { %v417_v62 = vsel %vm30_vm0, %v406_v59, 0.0 }
 0x56e   :  { %v412_v60 = vadd.f32 %v411_v56, %v410_v54  ;;  %v402_v61 = vpop.permute.xlu0 %401 }
 0x56f   :  { %v407_v53 = vmul.f32 %v402_v61, %v678_v5  ;;  %v534_v5 = vld [vmem:[%s852_s3] ss:$0 sm:$0xff] }
 0x570   :  { %v413_v63 = vrot.slane %v412_v60, 2 }
 0x571   :  { %v418_v2 = vsel %vm30_vm0, %v407_v53, 0.0 }
 0x572   :  { %v419_v1 = vadd.f32 %v418_v2, %v417_v62  ;;  %v414_v40 = vadd.f32 %v413_v63, %v412_v60 }
 0x574   :  { %v420_v6 = vrot.slane %v419_v1, 4  ;;  %v415_v7 = vrot.slane %v414_v40, 1 }
 0x576   :  { %v421_v3 = vadd.f32 %v420_v6, %v419_v1  ;;  %v416_v11 = vadd.f32 %v415_v7, %v414_v40 }
 0x578   :  { %v422_v4 = vrot.slane %v421_v3, 2 }
 0x57a   :  { %v423_v8 = vadd.f32 %v422_v4, %v421_v3 }
 0x57c   :  { %v424_v9 = vrot.slane %v423_v8, 1 }
 0x57e   :  { %v425_v12 = vadd.f32 %v424_v9, %v423_v8 }
 0x580   :  { %v439_v0 = vsel %vm126_vm2, %v425_v12, %v416_v11 }
 0x581   :  { %550 = vmatmul.mubr.msk.f32.vlgmr.msra.gmra.mrb[0].mxu0 %vm30_vm0, %v439_v0 }
 0x654   :  { %v508_v15 = vpop.f32.mrb[0].mxu0 }
 0x655   :  { %v509_v10 = vadd.f32 %v534_v5, %v508_v15  ;;  %v551_v16 = vpop.f32.mrb[1].mxu0 }
 0x657   :  { %513 = vst.msk [vmem:[#allocation3] sm:$0x3] %vm512_vm15, %v509_v10 }
 0x658   :  { %612 = shalt.err (!%p609_p4)
}
 0x659   :  { %s613_s16 = scalar_lea.hbm %s854_s5, 32 }
 0x65a   :  { %p614_p5 = scmp.ne.s32.totalorder %s854_s5, %s613_s16  ;;  %p617_p6 = scmp.lt.u32.totalorder %s613_s16, %s854_s5 }
 0x65c   :  { %p619_p7 = pnand %p617_p6, %p614_p5 }
 0x65e   :  { %622 = shalt.err (!%p619_p7)
}
 0x65f   :  { %523 = dma.vmem_to_hbm [thread:$0]  %s521_s12, 32, %s854_s5, [#allocation4]  }
 0x660   :  { %623 = dma.done.wait [#allocation4], 32  }
 0x661   :  { %624 = vsyncadd [#allocation4], 4294967264 }
 0x662   :  { %527 = vsyncpa [#allocation4], 1 }

</bundles_post_ra>
